<compile_context>
chip_gen: v7x
topology: tpu7x:2x2x1
jax: 0.10.0
libtpu: 0.0.40
codegen_flags: <defaults>
</compile_context>

<pallas_src>
import functools

import jax
import jax.numpy as jnp
from jax.experimental import pallas as pl
from jax.experimental.pallas import tpu as pltpu

IN_FEATURES = 2048
OUT_FEATURES = 87
N_PAD = 128          # pad 87 -> 128 for lane-dense (unmasked) stores
TB_DEFAULT = 256     # batch tile for large batches


def linear_kernel(x_ref, w_ref, b_ref, o_ref):
    """One batch tile: o = x @ W^T + b, full-K matmul in a single MXU pass."""
    x_bf = x_ref[...].astype(jnp.bfloat16)                 # bf16 MXU operands
    acc = jnp.dot(x_bf, w_ref[...], preferred_element_type=jnp.float32)
    o_ref[...] = (acc + b_ref[...]).astype(o_ref.dtype)    # bias add on VPU


@functools.partial(jax.jit, static_argnames=("tb",))
def resnet_classifier_forward(x, w_t_pad, b_pad, *, tb=TB_DEFAULT):
    """x: (B, 2048) f32, w_t_pad: (2048, 128) bf16, b_pad: (1, 128) f32 -> (B, 87)."""
    B, K = x.shape
    n_pad = w_t_pad.shape[1]

    # Batch tile: multiple of 8 sublanes, no larger than needed.
    tb = min(tb, max(8, ((B + 7) // 8) * 8))
    b_padded = ((B + tb - 1) // tb) * tb
    if b_padded != B:
        x = jnp.pad(x, ((0, b_padded - B), (0, 0)))

    out_padded = pl.pallas_call(
        linear_kernel,
        out_shape=jax.ShapeDtypeStruct((b_padded, n_pad), x.dtype),
        grid_spec=pltpu.PrefetchScalarGridSpec(
            num_scalar_prefetch=0,
            grid=(b_padded // tb,),
            in_specs=[
                pl.BlockSpec((tb, K), lambda b: (b, 0)),       # x batch tile
                pl.BlockSpec((K, n_pad), lambda b: (0, 0)),    # W^T (resident)
                pl.BlockSpec((1, n_pad), lambda b: (0, 0)),    # bias (resident)
            ],
            out_specs=pl.BlockSpec((tb, n_pad), lambda b: (b, 0)),
        ),
        compiler_params=pltpu.CompilerParams(
            dimension_semantics=("parallel",),   # batch shards across TCs
        ),
    )(x, w_t_pad, b_pad)

    return out_padded[:B, :OUT_FEATURES]


def init_params(key):
    """Deterministic init matching nn.Linear(2048, 87) parameter shapes."""
    kw, kb = jax.random.split(key)
    bound = 1.0 / (IN_FEATURES ** 0.5)  # PyTorch nn.Linear default bound
    weight = jax.random.uniform(
        kw, (OUT_FEATURES, IN_FEATURES), jnp.float32, -bound, bound
    )
    bias = jax.random.uniform(
        kb, (OUT_FEATURES,), jnp.float32, -bound, bound
    )
    return weight, bias


def pack_params(weight, bias):
    """Pre-transpose + zero-pad params for the kernel (plain-JAX glue)."""
    w_t_pad = jnp.zeros((IN_FEATURES, N_PAD), jnp.bfloat16)
    w_t_pad = w_t_pad.at[:, :OUT_FEATURES].set(weight.T.astype(jnp.bfloat16))
    b_pad = jnp.zeros((1, N_PAD), jnp.float32)
    b_pad = b_pad.at[0, :OUT_FEATURES].set(bias)
    return w_t_pad, b_pad


if __name__ == "__main__":
    key = jax.random.PRNGKey(0)
    k_x, k_p = jax.random.split(key)

    B = 8
    x = jax.random.normal(k_x, (B, IN_FEATURES), jnp.float32)
    weight, bias = init_params(k_p)
    w_t_pad, b_pad = pack_params(weight, bias)

    out = resnet_classifier_forward(x, w_t_pad, b_pad)
    out = jax.block_until_ready(out)

    # Pure-JAX f32 reference of the PyTorch forward: out = x @ W.T + b.
    # Tolerance is relaxed to cover the bf16 weight quantization in the kernel
    # (logits have std ~0.6; bf16 rounding error is ~1e-3 absolute here).
    ref = x @ weight.T + bias

    assert out.shape == (B, OUT_FEATURES), out.shape
    err = float(jnp.max(jnp.abs(out - ref)))
    assert jnp.allclose(out, ref, atol=3e-2, rtol=3e-2), err
    print("KERNEL_OK")
</pallas_src>

<mosaic_0001>
module attributes {stable_mosaic.version = 11 : i64} {
  func.func @linear_kernel(%arg0: i32, %arg1: memref<8x2048xf32, #tpu.memory_space<vmem>>, %arg2: memref<2048x128xbf16, #tpu.memory_space<vmem>>, %arg3: memref<1x128xf32, #tpu.memory_space<vmem>>, %arg4: memref<8x128xf32, #tpu.memory_space<vmem>>) attributes {dimension_semantics = [#tpu.dimension_semantics<parallel>], iteration_bounds = array<i64: 1>, scalar_prefetch = 0 : i64, scratch_operands = 0 : i64, tpu.core_type = #tpu.core_type<tc>, window_params = [{transform_indices = @transform_0, window_bounds = array<i64: 8, 2048>}, {pipeline_mode = #tpu.pipeline_mode<synchronous>, transform_indices = @transform_1, window_bounds = array<i64: 2048, 128>}, {pipeline_mode = #tpu.pipeline_mode<synchronous>, transform_indices = @transform_2, window_bounds = array<i64: 1, 128>}, {transform_indices = @transform_3, window_bounds = array<i64: 8, 128>}]} {
    %c0 = arith.constant 0 : index
    %c0_0 = arith.constant 0 : index
    %0 = vector.load %arg1[%c0, %c0_0] : memref<8x2048xf32, #tpu.memory_space<vmem>>, vector<8x2048xf32>
    %1 = arith.truncf %0 : vector<8x2048xf32> to vector<8x2048xbf16>
    %c0_1 = arith.constant 0 : index
    %c0_2 = arith.constant 0 : index
    %2 = vector.load %arg2[%c0_1, %c0_2] : memref<2048x128xbf16, #tpu.memory_space<vmem>>, vector<2048x128xbf16>
    %cst = arith.constant dense<0.000000e+00> : vector<8x128xf32>
    %3 = tpu.matmul %1, %2, %cst {dimension_numbers = #tpu.dot_dimension_numbers<[1], [0], [0], [1], [0, 0, 1, 1], [], []>} : vector<8x2048xbf16>, vector<2048x128xbf16>, vector<8x128xf32> -> vector<8x128xf32>
    %c0_3 = arith.constant 0 : index
    %c0_4 = arith.constant 0 : index
    %4 = vector.load %arg3[%c0_3, %c0_4] : memref<1x128xf32, #tpu.memory_space<vmem>>, vector<1x128xf32>
    %5 = vector.broadcast %4 : vector<1x128xf32> to vector<8x128xf32>
    %6 = arith.addf %3, %5 : vector<8x128xf32>
    %c0_5 = arith.constant 0 : index
    %c0_6 = arith.constant 0 : index
    %7 = vector.load %arg4[%c0_5, %c0_6] : memref<8x128xf32, #tpu.memory_space<vmem>>, vector<8x128xf32>
    tpu.vector_store %arg4[%c0_5, %c0_6], %6 {strides = array<i32>} : memref<8x128xf32, #tpu.memory_space<vmem>>, vector<8x128xf32>,
    return
  }
  func.func @transform_0(%arg0: i32) -> (i32, i32) {
    %c0_i32 = arith.constant 0 : i32
    %c0_i32_0 = arith.constant 0 : i32
    return %arg0, %c0_i32 : i32, i32
  }
  func.func @transform_1(%arg0: i32) -> (i32, i32) {
    %c0_i32 = arith.constant 0 : i32
    %c0_i32_0 = arith.constant 0 : i32
    %c0_i32_1 = arith.constant 0 : i32
    return %c0_i32, %c0_i32_0 : i32, i32
  }
  func.func @transform_2(%arg0: i32) -> (i32, i32) {
    %c0_i32 = arith.constant 0 : i32
    %c0_i32_0 = arith.constant 0 : i32
    %c0_i32_1 = arith.constant 0 : i32
    return %c0_i32, %c0_i32_0 : i32, i32
  }
  func.func @transform_3(%arg0: i32) -> (i32, i32) {
    %c0_i32 = arith.constant 0 : i32
    %c0_i32_0 = arith.constant 0 : i32
    return %arg0, %c0_i32 : i32, i32
  }
}

</mosaic_0001>

<bundles_post_ra>
// kernel: resnet_classifier_forward.1
= control target key start
LH: loop header
LB: loop body
LE: loop exit
PB: predicated region body
PF: predicated region fallthrough
CT: control target
= control target key end

     0   :  { %8 = vsyncpa [#allocation3], 0  ;;  %s2023_s0 = inlined_call_operand.hbm [shape: f32[8,2048], index: 0, kind: input, shape index: {}]   ;;  %s2024_s1 = inlined_call_operand.hbm [shape: bf16[2048,128], index: 1, kind: input, shape index: {}]   ;;  %s2025_s2 = inlined_call_operand.vmem [shape: f32[1,128], index: 2, kind: input, shape index: {}]   ;;  %s2026_s3 = inlined_call_operand.hbm [shape: f32[8,128], index: 3, kind: output, shape index: {}]  }
   0x1   :  { %9 = vsyncpa [#allocation6], 0 }
   0x2   :  { %10 = vsyncpa [#allocation4], 0  ;;  %s1952_s12 = smov [#allocation2]   ;;  %s1953_s14 = smov [#allocation5]  }
   0x3   :  { %s17_s13 = sshll.u32 %s1952_s12, 4  ;;  %s26_s15 = sshll.u32 %s1953_s14, 4  ;;  %s18_s13 = int_to_ptr.vmem [resolvable:$true] %s17_s13  ;;  %s1977_s15 = int_to_ptr.vmem [resolvable:$true] %s26_s15 }
   0x4   :  { %s1880_s18 = scalar_lea.hbm %s2023_s0, 2048 }
   0x5   :  { %p1881_p0 = scmp.ne.s32.totalorder %s2023_s0, %s1880_s18  ;;  %p1884_p1 = scmp.lt.u32.totalorder %s1880_s18, %s2023_s0 }
   0x7   :  { %p1886_p2 = pnand %p1884_p1, %p1881_p0 }
   0x9   :  { %1889 = shalt.err (!%p1886_p2)
}
   0xa   :  { %s1890_s23 = scalar_lea.vmem %s18_s13, 2048  ;;  %p1895_p4 = scmp.lt.s32.totalorder %s18_s13, %s18_s13 }
   0xb   :  { %p1891_p3 = scmp.ne.s32.totalorder %s18_s13, %s1890_s23  ;;  %p1896_p5 = scmp.lt.s32.totalorder %s1890_s23, %s1890_s23 }
   0xd   :  { %p1897_p6 = por %p1896_p5, %p1895_p4 }
   0xf   :  { %p1898_p7 = pnand %p1897_p6, %p1891_p3 }
  0x11   :  { %1901 = shalt.err (!%p1898_p7)
}
  0x12   :  { %20 = dma.hbm_to_vmem [thread:$0]  %s2023_s0, 2048, %s18_s13, [#allocation3]  }
  0x13   :  { %s1902_s28 = scalar_lea.hbm %s2024_s1, 16384 }
  0x14   :  { %p1903_p8 = scmp.ne.s32.totalorder %s2024_s1, %s1902_s28  ;;  %p1906_p9 = scmp.lt.u32.totalorder %s1902_s28, %s2024_s1 }
  0x16   :  { %p1908_p10 = pnand %p1906_p9, %p1903_p8 }
  0x18   :  { %1911 = shalt.err (!%p1908_p10)
}
  0x19   :  { %s1912_s6 = scalar_lea.vmem %s1977_s15, 16384  ;;  %p1917_p12 = scmp.lt.s32.totalorder %s1977_s15, %s1977_s15 }
  0x1a   :  { %p1913_p11 = scmp.ne.s32.totalorder %s1977_s15, %s1912_s6  ;;  %p1918_p13 = scmp.lt.s32.totalorder %s1912_s6, %s1912_s6 }
  0x1c   :  { %p1919_p0 = por %p1918_p13, %p1917_p12 }
  0x1e   :  { %p1920_p1 = pnand %p1919_p0, %p1913_p11 }
  0x20   :  { %1923 = shalt.err (!%p1920_p1)
}
  0x21   :  { %s1954_s0 = smov 64   ;;  %s1955_s7 = smov 4  }
  0x22   :  { %32 = dma.hbm_to_vmem [thread:$0]  %s2024_s1, 16384, %s1977_s15, [#allocation6], %s1954_s0, %s1954_s0, %s1955_s7  }
  0x23   :  { %1946 = dma.done.wait [#allocation3], 2048  }
  0x24   :  { %1947 = vsyncadd [#allocation3], 4294965248 }
  0x25   :  { %1948 = dma.done.wait [#allocation6], 16384  }
  0x26   :  { %1949 = vsyncadd [#allocation6], 4294950912  ;;  %v1752_v0 = vld [vmem:[#allocation5 + $0x40] sm:$0xff]   ;;  %v1756_v4 = vld [vmem:[#allocation5 + $0x48] sm:$0xff]  }
  0x27   :  { %v1753_v1 = vld [vmem:[#allocation5 + $0xc0] sm:$0xff]   ;;  %1571 = vmatprep.subr.bf16.mxu0 %v1752_v0  ;;  %v1757_v5 = vld [vmem:[#allocation5 + $0xc8] sm:$0xff]   ;;  %v1760_v8 = vld [vmem:[#allocation5 + $0x50] sm:$0xff]  }
  0x28   :  { %v1754_v2 = vld [vmem:[#allocation5] sm:$0xff]   ;;  %1593 = vmatprep.subr.bf16.mxu1 %v1753_v1  ;;  %v1758_v6 = vld [vmem:[#allocation5 + $0x8] sm:$0xff]   ;;  %v1761_v9 = vld [vmem:[#allocation5 + $0xd0] sm:$0xff]  }
  0x29   :  { %v1755_v3 = vld [vmem:[#allocation5 + $0x80] sm:$0xff]   ;;  %1572 = vmatpush3.bf16.msra.mxu0 %v1754_v2  ;;  %v1759_v7 = vld [vmem:[#allocation5 + $0x88] sm:$0xff]   ;;  %v1762_v10 = vld [vmem:[#allocation5 + $0x10] sm:$0xff]  }
  0x2a   :  { %1594 = vmatpush3.bf16.msra.mxu1 %v1755_v3  ;;  %1573 = vmatprep.subr.bf16.mxu0 %v1756_v4  ;;  %v1763_v11 = vld [vmem:[#allocation5 + $0x90] sm:$0xff]   ;;  %v1764_v12 = vld [vmem:[#allocation5 + $0x58] sm:$0xff]   ;;  %v1768_v16 = vld [vmem:[#allocation5 + $0x60] sm:$0xff]  }
  0x2b   :  { %1595 = vmatprep.subr.bf16.mxu1 %v1757_v5  ;;  %v1765_v13 = vld [vmem:[#allocation5 + $0xd8] sm:$0xff]   ;;  %v1769_v17 = vld [vmem:[#allocation5 + $0xe0] sm:$0xff]   ;;  %v1772_v20 = vld [vmem:[#allocation5 + $0x68] sm:$0xff]  }
  0x2c   :  { %v1766_v14 = vld [vmem:[#allocation5 + $0x18] sm:$0xff]   ;;  %v1770_v18 = vld [vmem:[#allocation5 + $0x20] sm:$0xff]   ;;  %v1773_v21 = vld [vmem:[#allocation5 + $0xe8] sm:$0xff]  }
  0x2d   :  { %1574 = vmatpush3.bf16.msra.mxu0 %v1758_v6  ;;  %v1767_v15 = vld [vmem:[#allocation5 + $0x98] sm:$0xff]   ;;  %v1771_v19 = vld [vmem:[#allocation5 + $0xa0] sm:$0xff]   ;;  %v1774_v22 = vld [vmem:[#allocation5 + $0x28] sm:$0xff]  }
  0x2e   :  { %1596 = vmatpush3.bf16.msra.mxu1 %v1759_v7  ;;  %1575 = vmatprep.subr.bf16.mxu0 %v1760_v8  ;;  %v1775_v23 = vld [vmem:[#allocation5 + $0xa8] sm:$0xff]   ;;  %v1776_v24 = vld [vmem:[#allocation5 + $0x70] sm:$0xff]   ;;  %v1780_v28 = vld [vmem:[#allocation5 + $0x78] sm:$0xff]  }
  0x2f   :  { %1597 = vmatprep.subr.bf16.mxu1 %v1761_v9  ;;  %v1777_v25 = vld [vmem:[#allocation5 + $0xf0] sm:$0xff]   ;;  %v1781_v29 = vld [vmem:[#allocation5 + $0xf8] sm:$0xff]   ;;  %v43_v32 = vld [vmem:[#allocation2 + $0x8] sm:$0xff] }
  0x30   :  { %v1778_v26 = vld [vmem:[#allocation5 + $0x30] sm:$0xff]   ;;  %v1782_v30 = vld [vmem:[#allocation5 + $0x38] sm:$0xff]   ;;  %v42_v34 = vld [vmem:[#allocation2] sm:$0xff]  ;;  %v59_v35 = vpack.c.bf16 %v43_v32, %v43_v32 }
  0x31   :  { %1576 = vmatpush3.bf16.msra.mxu0 %v1762_v10  ;;  %v1779_v27 = vld [vmem:[#allocation5 + $0xb0] sm:$0xff]   ;;  %v1783_v31 = vld [vmem:[#allocation5 + $0xb8] sm:$0xff]   ;;  %v58_v37 = vpack.c.bf16 %v42_v34, %v42_v34  ;;  %v1784_v40 = vld [vmem:[#allocation5 + $0x140] sm:$0xff]  }
  0x32   :  { %1598 = vmatpush3.bf16.msra.mxu1 %v1763_v11  ;;  %1577 = vmatprep.subr.bf16.mxu0 %v1764_v12  ;;  %v45_v33 = vld [vmem:[#allocation2 + $0x18] sm:$0xff]  ;;  %v44_v38 = vld [vmem:[#allocation2 + $0x10] sm:$0xff]  ;;  %v1785_v41 = vld [vmem:[#allocation5 + $0x1c0] sm:$0xff]  }
  0x33   :  { %1599 = vmatprep.subr.bf16.mxu1 %v1765_v13  ;;  %v61_v36 = vpack.c.bf16 %v45_v33, %v45_v33  ;;  %v60_v39 = vpack.c.bf16 %v44_v38, %v44_v38  ;;  %1137 = vmatprep.mubr.bf16.mxu0 %v59_v35  ;;  %v1786_v42 = vld [vmem:[#allocation5 + $0x100] sm:$0xff]   ;;  %v1788_v44 = vld [vmem:[#allocation5 + $0x148] sm:$0xff]   ;;  %v1792_v48 = vld [vmem:[#allocation5 + $0x150] sm:$0xff]  }
  0x34   :  { %v1787_v43 = vld [vmem:[#allocation5 + $0x180] sm:$0xff]   ;;  %v1789_v45 = vld [vmem:[#allocation5 + $0x1c8] sm:$0xff]   ;;  %v1793_v49 = vld [vmem:[#allocation5 + $0x1d0] sm:$0xff]  }
  0x35   :  { %1578 = vmatpush3.bf16.msra.mxu0 %v1766_v14  ;;  %1177 = vmatprep.mubr.bf16.mxu1 %v61_v36  ;;  %v1790_v46 = vld [vmem:[#allocation5 + $0x108] sm:$0xff]   ;;  %v1794_v50 = vld [vmem:[#allocation5 + $0x110] sm:$0xff]   ;;  %v1796_v52 = vld [vmem:[#allocation5 + $0x158] sm:$0xff]  }
  0x36   :  { %1600 = vmatpush3.bf16.msra.mxu1 %v1767_v15  ;;  %1579 = vmatprep.subr.bf16.mxu0 %v1768_v16  ;;  %v1791_v47 = vld [vmem:[#allocation5 + $0x188] sm:$0xff]   ;;  %v1795_v51 = vld [vmem:[#allocation5 + $0x190] sm:$0xff]   ;;  %v1797_v53 = vld [vmem:[#allocation5 + $0x1d8] sm:$0xff]  }
  0x37   :  { %1601 = vmatprep.subr.bf16.mxu1 %v1769_v17  ;;  %v1798_v54 = vld [vmem:[#allocation5 + $0x118] sm:$0xff]   ;;  %v1800_v56 = vld [vmem:[#allocation5 + $0x160] sm:$0xff]   ;;  %v1804_v60 = vld [vmem:[#allocation5 + $0x168] sm:$0xff]  }
  0x38   :  { %v1799_v55 = vld [vmem:[#allocation5 + $0x198] sm:$0xff]   ;;  %v1801_v57 = vld [vmem:[#allocation5 + $0x1e0] sm:$0xff]   ;;  %v1805_v61 = vld [vmem:[#allocation5 + $0x1e8] sm:$0xff]  }
  0x39   :  { %1580 = vmatpush3.bf16.msra.mxu0 %v1770_v18  ;;  %v1802_v58 = vld [vmem:[#allocation5 + $0x120] sm:$0xff]   ;;  %v1806_v62 = vld [vmem:[#allocation5 + $0x128] sm:$0xff]   ;;  %v1808_v0 = vld [vmem:[#allocation5 + $0x170] sm:$0xff]  }
  0x3a   :  { %1602 = vmatpush3.bf16.msra.mxu1 %v1771_v19  ;;  %1581 = vmatprep.subr.bf16.mxu0 %v1772_v20  ;;  %v1803_v59 = vld [vmem:[#allocation5 + $0x1a0] sm:$0xff]   ;;  %v1807_v63 = vld [vmem:[#allocation5 + $0x1a8] sm:$0xff]   ;;  %v1809_v1 = vld [vmem:[#allocation5 + $0x1f0] sm:$0xff]  }
  0x3b   :  { %1603 = vmatprep.subr.bf16.mxu1 %v1773_v21  ;;  %v1810_v2 = vld [vmem:[#allocation5 + $0x130] sm:$0xff]   ;;  %v1812_v4 = vld [vmem:[#allocation5 + $0x178] sm:$0xff]   ;;  %v47_v8 = vld [vmem:[#allocation2 + $0x28] sm:$0xff] }
  0x3c   :  { %v1811_v3 = vld [vmem:[#allocation5 + $0x1b0] sm:$0xff]   ;;  %v1813_v5 = vld [vmem:[#allocation5 + $0x1f8] sm:$0xff]   ;;  %v63_v10 = vpack.c.bf16 %v47_v8, %v47_v8  ;;  %v46_v12 = vld [vmem:[#allocation2 + $0x20] sm:$0xff] }
  0x3d   :  { %1582 = vmatpush3.bf16.msra.mxu0 %v1774_v22  ;;  %v1814_v6 = vld [vmem:[#allocation5 + $0x138] sm:$0xff]   ;;  %v48_v13 = vld [vmem:[#allocation2 + $0x30] sm:$0xff]  ;;  %v62_v14 = vpack.c.bf16 %v46_v12, %v46_v12  ;;  %v1816_v16 = vld [vmem:[#allocation5 + $0x240] sm:$0xff]  }
  0x3e   :  { %1604 = vmatpush3.bf16.msra.mxu1 %v1775_v23  ;;  %1583 = vmatprep.subr.bf16.mxu0 %v1776_v24  ;;  %v1815_v7 = vld [vmem:[#allocation5 + $0x1b8] sm:$0xff]   ;;  %v64_v15 = vpack.c.bf16 %v48_v13, %v48_v13  ;;  %v1817_v17 = vld [vmem:[#allocation5 + $0x2c0] sm:$0xff]   ;;  %v1820_v20 = vld [vmem:[#allocation5 + $0x248] sm:$0xff]  }
  0x3f   :  { %1605 = vmatprep.subr.bf16.mxu1 %v1777_v25  ;;  %v49_v9 = vld [vmem:[#allocation2 + $0x38] sm:$0xff]  ;;  %v1818_v18 = vld [vmem:[#allocation5 + $0x200] sm:$0xff]   ;;  %v1821_v21 = vld [vmem:[#allocation5 + $0x2c8] sm:$0xff]  }
  0x40   :  { %v65_v11 = vpack.c.bf16 %v49_v9, %v49_v9  ;;  %v1819_v19 = vld [vmem:[#allocation5 + $0x280] sm:$0xff]   ;;  %v1822_v22 = vld [vmem:[#allocation5 + $0x208] sm:$0xff]   ;;  %v1824_v24 = vld [vmem:[#allocation5 + $0x250] sm:$0xff]  }
  0x41   :  { %1584 = vmatpush3.bf16.msra.mxu0 %v1778_v26  ;;  %v1823_v23 = vld [vmem:[#allocation5 + $0x288] sm:$0xff]   ;;  %v1825_v25 = vld [vmem:[#allocation5 + $0x2d0] sm:$0xff]   ;;  %v1832_v32 = vld [vmem:[#allocation5 + $0x260] sm:$0xff]  }
  0x42   :  { %1606 = vmatpush3.bf16.msra.mxu1 %v1779_v27  ;;  %1585 = vmatprep.subr.bf16.mxu0 %v1780_v28  ;;  %v1826_v26 = vld [vmem:[#allocation5 + $0x210] sm:$0xff]   ;;  %v1828_v28 = vld [vmem:[#allocation5 + $0x258] sm:$0xff]   ;;  %v1833_v33 = vld [vmem:[#allocation5 + $0x2e0] sm:$0xff]  }
  0x43   :  { %1607 = vmatprep.subr.bf16.mxu1 %v1781_v29  ;;  %v1827_v27 = vld [vmem:[#allocation5 + $0x290] sm:$0xff]   ;;  %v1829_v29 = vld [vmem:[#allocation5 + $0x2d8] sm:$0xff]   ;;  %v1834_v34 = vld [vmem:[#allocation5 + $0x220] sm:$0xff]  }
  0x44   :  { %v1835_v35 = vld [vmem:[#allocation5 + $0x2a0] sm:$0xff]   ;;  %v1836_v36 = vld [vmem:[#allocation5 + $0x268] sm:$0xff]  }
  0x45   :  { %1586 = vmatpush3.bf16.msra.mxu0 %v1782_v30  ;;  %v1830_v30 = vld [vmem:[#allocation5 + $0x218] sm:$0xff]   ;;  %v1838_v38 = vld [vmem:[#allocation5 + $0x228] sm:$0xff]   ;;  %v1864_v8 = vld [vmem:[#allocation5 + $0x360] sm:$0xff]  }
  0x46   :  { %1608 = vmatpush3.bf16.msra.mxu1 %v1783_v31  ;;  %1615 = vmatprep.subr.bf16.mxu0 %v1784_v40  ;;  %v1831_v31 = vld [vmem:[#allocation5 + $0x298] sm:$0xff]   ;;  %v1840_v40 = vld [vmem:[#allocation5 + $0x270] sm:$0xff]   ;;  %v1865_v9 = vld [vmem:[#allocation5 + $0x3e0] sm:$0xff]  }
  0x47   :  { %1637 = vmatprep.subr.bf16.mxu1 %v1785_v41  ;;  %v1841_v41 = vld [vmem:[#allocation5 + $0x2f0] sm:$0xff]   ;;  %v1868_v12 = vld [vmem:[#allocation5 + $0x368] sm:$0xff]  }
  0x48   :  { %1138 = vmatmul.mubr.bf16.vlgmr.msra.gmra.mrb[0].mxu0 %v58_v37  ;;  %v1837_v37 = vld [vmem:[#allocation5 + $0x2e8] sm:$0xff]  }
  0x49   :  { %1178 = vmatmul.mubr.bf16.vlgmr.msra.gmra.mrb[0].mxu1 %v60_v39  ;;  %1616 = vmatpush3.bf16.msra.mxu0 %v1786_v42  ;;  %v1839_v39 = vld [vmem:[#allocation5 + $0x2a8] sm:$0xff]   ;;  %v1842_v42 = vld [vmem:[#allocation5 + $0x230] sm:$0xff]  }
  0x4a   :  { %1638 = vmatpush3.bf16.msra.mxu1 %v1787_v43  ;;  %1617 = vmatprep.subr.bf16.mxu0 %v1788_v44  ;;  %v1843_v43 = vld [vmem:[#allocation5 + $0x2b0] sm:$0xff]   ;;  %v1844_v44 = vld [vmem:[#allocation5 + $0x278] sm:$0xff]   ;;  %v1869_v13 = vld [vmem:[#allocation5 + $0x3e8] sm:$0xff]  }
  0x4b   :  { %1639 = vmatprep.subr.bf16.mxu1 %v1789_v45  ;;  %1217 = vmatprep.mubr.bf16.mxu0 %v63_v10  ;;  %v1845_v45 = vld [vmem:[#allocation5 + $0x2f8] sm:$0xff]   ;;  %v1866_v10 = vld [vmem:[#allocation5 + $0x320] sm:$0xff]  }
  0x4c   :  { %1257 = vmatprep.mubr.bf16.mxu1 %v65_v11  ;;  %v1867_v11 = vld [vmem:[#allocation5 + $0x3a0] sm:$0xff]  }
  0x4d   :  { %1618 = vmatpush3.bf16.msra.mxu0 %v1790_v46  ;;  %v1846_v46 = vld [vmem:[#allocation5 + $0x238] sm:$0xff]  }
  0x4e   :  { %1640 = vmatpush3.bf16.msra.mxu1 %v1791_v47  ;;  %1619 = vmatprep.subr.bf16.mxu0 %v1792_v48  ;;  %v1847_v47 = vld [vmem:[#allocation5 + $0x2b8] sm:$0xff]   ;;  %v51_v48 = vld [vmem:[#allocation2 + $0x48] sm:$0xff] }
  0x4f   :  { %1641 = vmatprep.subr.bf16.mxu1 %v1793_v49  ;;  %v67_v49 = vpack.c.bf16 %v51_v48, %v51_v48 }
  0x51   :  { %1620 = vmatpush3.bf16.msra.mxu0 %v1794_v50  ;;  %v53_v50 = vld [vmem:[#allocation2 + $0x58] sm:$0xff] }
  0x52   :  { %1642 = vmatpush3.bf16.msra.mxu1 %v1795_v51  ;;  %1621 = vmatprep.subr.bf16.mxu0 %v1796_v52  ;;  %v50_v51 = vld [vmem:[#allocation2 + $0x40] sm:$0xff]  ;;  %v52_v52 = vld [vmem:[#allocation2 + $0x50] sm:$0xff] }
  0x53   :  { %1643 = vmatprep.subr.bf16.mxu1 %v1797_v53  ;;  %v69_v53 = vpack.c.bf16 %v53_v50, %v53_v50 }
  0x55   :  { %1622 = vmatpush3.bf16.msra.mxu0 %v1798_v54  ;;  %v66_v54 = vpack.c.bf16 %v50_v51, %v50_v51 }
  0x56   :  { %1644 = vmatpush3.bf16.msra.mxu1 %v1799_v55  ;;  %1623 = vmatprep.subr.bf16.mxu0 %v1800_v56  ;;  %v68_v55 = vpack.c.bf16 %v52_v52, %v52_v52  ;;  %v1848_v56 = vld [vmem:[#allocation5 + $0x340] sm:$0xff]  }
  0x57   :  { %1645 = vmatprep.subr.bf16.mxu1 %v1801_v57  ;;  %v1849_v57 = vld [vmem:[#allocation5 + $0x3c0] sm:$0xff]  }
  0x59   :  { %1624 = vmatpush3.bf16.msra.mxu0 %v1802_v58  ;;  %v1850_v58 = vld [vmem:[#allocation5 + $0x300] sm:$0xff]  }
  0x5a   :  { %1646 = vmatpush3.bf16.msra.mxu1 %v1803_v59  ;;  %1625 = vmatprep.subr.bf16.mxu0 %v1804_v60  ;;  %v1851_v59 = vld [vmem:[#allocation5 + $0x380] sm:$0xff]   ;;  %v1852_v60 = vld [vmem:[#allocation5 + $0x348] sm:$0xff]  }
  0x5b   :  { %1647 = vmatprep.subr.bf16.mxu1 %v1805_v61  ;;  %v1853_v61 = vld [vmem:[#allocation5 + $0x3c8] sm:$0xff]  }
  0x5d   :  { %1626 = vmatpush3.bf16.msra.mxu0 %v1806_v62  ;;  %v1854_v62 = vld [vmem:[#allocation5 + $0x308] sm:$0xff]  }
  0x5e   :  { %1648 = vmatpush3.bf16.msra.mxu1 %v1807_v63  ;;  %1627 = vmatprep.subr.bf16.mxu0 %v1808_v0  ;;  %v1855_v63 = vld [vmem:[#allocation5 + $0x388] sm:$0xff]   ;;  %v1856_v0 = vld [vmem:[#allocation5 + $0x350] sm:$0xff]  }
  0x5f   :  { %1649 = vmatprep.subr.bf16.mxu1 %v1809_v1  ;;  %v1857_v1 = vld [vmem:[#allocation5 + $0x3d0] sm:$0xff]  }
  0x61   :  { %1628 = vmatpush3.bf16.msra.mxu0 %v1810_v2  ;;  %v1858_v2 = vld [vmem:[#allocation5 + $0x310] sm:$0xff]  }
  0x62   :  { %1650 = vmatpush3.bf16.msra.mxu1 %v1811_v3  ;;  %1629 = vmatprep.subr.bf16.mxu0 %v1812_v4  ;;  %v1859_v3 = vld [vmem:[#allocation5 + $0x390] sm:$0xff]   ;;  %v1860_v4 = vld [vmem:[#allocation5 + $0x358] sm:$0xff]  }
  0x63   :  { %1651 = vmatprep.subr.bf16.mxu1 %v1813_v5  ;;  %v1861_v5 = vld [vmem:[#allocation5 + $0x3d8] sm:$0xff]  }
  0x65   :  { %1630 = vmatpush3.bf16.msra.mxu0 %v1814_v6  ;;  %v1862_v6 = vld [vmem:[#allocation5 + $0x318] sm:$0xff]  }
  0x66   :  { %1652 = vmatpush3.bf16.msra.mxu1 %v1815_v7  ;;  %1659 = vmatprep.subr.bf16.mxu0 %v1816_v16  ;;  %v1863_v7 = vld [vmem:[#allocation5 + $0x398] sm:$0xff]   ;;  %v1872_v16 = vld [vmem:[#allocation5 + $0x370] sm:$0xff]  }
  0x67   :  { %1681 = vmatprep.subr.bf16.mxu1 %v1817_v17  ;;  %v1873_v17 = vld [vmem:[#allocation5 + $0x3f0] sm:$0xff]  }
  0x68   :  { %1218 = vmatmul.mubr.bf16.vlgmr.msra.gmra.mrb[4].mxu0 %v62_v14  ;;  %v1870_v14 = vld [vmem:[#allocation5 + $0x328] sm:$0xff]  }
  0x69   :  { %1258 = vmatmul.mubr.bf16.vlgmr.msra.gmra.mrb[4].mxu1 %v64_v15  ;;  %1660 = vmatpush3.bf16.msra.mxu0 %v1818_v18  ;;  %v1871_v15 = vld [vmem:[#allocation5 + $0x3a8] sm:$0xff]   ;;  %v1874_v18 = vld [vmem:[#allocation5 + $0x330] sm:$0xff]  }
  0x6a   :  { %1682 = vmatpush3.bf16.msra.mxu1 %v1819_v19  ;;  %1661 = vmatprep.subr.bf16.mxu0 %v1820_v20  ;;  %v1875_v19 = vld [vmem:[#allocation5 + $0x3b0] sm:$0xff]   ;;  %v1876_v20 = vld [vmem:[#allocation5 + $0x378] sm:$0xff]  }
  0x6b   :  { %1683 = vmatprep.subr.bf16.mxu1 %v1821_v21  ;;  %1297 = vmatprep.mubr.bf16.mxu0 %v67_v49  ;;  %v1877_v21 = vld [vmem:[#allocation5 + $0x3f8] sm:$0xff]  }
  0x6c   :  { %1337 = vmatprep.mubr.bf16.mxu1 %v69_v53 }
  0x6d   :  { %1662 = vmatpush3.bf16.msra.mxu0 %v1822_v22  ;;  %v1878_v22 = vld [vmem:[#allocation5 + $0x338] sm:$0xff]  }
  0x6e   :  { %1684 = vmatpush3.bf16.msra.mxu1 %v1823_v23  ;;  %1663 = vmatprep.subr.bf16.mxu0 %v1824_v24  ;;  %v1879_v23 = vld [vmem:[#allocation5 + $0x3b8] sm:$0xff]   ;;  %v55_v24 = vld [vmem:[#allocation2 + $0x68] sm:$0xff] }
  0x6f   :  { %1685 = vmatprep.subr.bf16.mxu1 %v1825_v25  ;;  %v57_v25 = vld [vmem:[#allocation2 + $0x78] sm:$0xff] }
  0x71   :  { %1664 = vmatpush3.bf16.msra.mxu0 %v1826_v26  ;;  %v54_v26 = vld [vmem:[#allocation2 + $0x60] sm:$0xff] }
  0x72   :  { %1686 = vmatpush3.bf16.msra.mxu1 %v1827_v27  ;;  %1665 = vmatprep.subr.bf16.mxu0 %v1828_v28  ;;  %v71_v27 = vpack.c.bf16 %v55_v24, %v55_v24  ;;  %v73_v28 = vpack.c.bf16 %v57_v25, %v57_v25 }
  0x73   :  { %1687 = vmatprep.subr.bf16.mxu1 %v1829_v29  ;;  %v70_v29 = vpack.c.bf16 %v54_v26, %v54_v26 }
  0x75   :  { %1666 = vmatpush3.bf16.msra.mxu0 %v1830_v30  ;;  %v56_v30 = vld [vmem:[#allocation2 + $0x70] sm:$0xff] }
  0x76   :  { %1688 = vmatpush3.bf16.msra.mxu1 %v1831_v31  ;;  %1667 = vmatprep.subr.bf16.mxu0 %v1832_v32  ;;  %v72_v31 = vpack.c.bf16 %v56_v30, %v56_v30 }
  0x77   :  { %1689 = vmatprep.subr.bf16.mxu1 %v1833_v33 }
  0x79   :  { %1668 = vmatpush3.bf16.msra.mxu0 %v1834_v34  ;;  %v1442_v34 = vld [vmem:[%s2025_s2] ss:$0 sm:$0xff]  ;;  %s1956_s2 = smov [#allocation7]  }
  0x7a   :  { %1690 = vmatpush3.bf16.msra.mxu1 %v1835_v35  ;;  %1669 = vmatprep.subr.bf16.mxu0 %v1836_v36  ;;  %s1432_s11 = sshll.u32 %s1956_s2, 4  ;;  %s1433_s11 = int_to_ptr.vmem [resolvable:$true] %s1432_s11 }
  0x7b   :  { %1691 = vmatprep.subr.bf16.mxu1 %v1837_v37  ;;  %s1924_s12 = scalar_lea.vmem %s1433_s11, 128  ;;  %p1929_p3 = scmp.lt.s32.totalorder %s1433_s11, %s1433_s11 }
  0x7c   :  { %p1925_p2 = scmp.ne.s32.totalorder %s1433_s11, %s1924_s12  ;;  %p1930_p4 = scmp.lt.s32.totalorder %s1924_s12, %s1924_s12 }
  0x7d   :  { %1670 = vmatpush3.bf16.msra.mxu0 %v1838_v38 }
  0x7e   :  { %1692 = vmatpush3.bf16.msra.mxu1 %v1839_v39  ;;  %1671 = vmatprep.subr.bf16.mxu0 %v1840_v40  ;;  %p1931_p5 = por %p1930_p4, %p1929_p3 }
  0x7f   :  { %1693 = vmatprep.subr.bf16.mxu1 %v1841_v41 }
  0x80   :  { %p1932_p6 = pnand %p1931_p5, %p1925_p2 }
  0x81   :  { %1672 = vmatpush3.bf16.msra.mxu0 %v1842_v42 }
  0x82   :  { %1694 = vmatpush3.bf16.msra.mxu1 %v1843_v43  ;;  %1673 = vmatprep.subr.bf16.mxu0 %v1844_v44 }
  0x83   :  { %1695 = vmatprep.subr.bf16.mxu1 %v1845_v45 }
  0x85   :  { %1674 = vmatpush3.bf16.msra.mxu0 %v1846_v46 }
  0x86   :  { %1696 = vmatpush3.bf16.msra.mxu1 %v1847_v47  ;;  %1703 = vmatprep.subr.bf16.mxu0 %v1848_v56 }
  0x87   :  { %1725 = vmatprep.subr.bf16.mxu1 %v1849_v57 }
  0x88   :  { %1298 = vmatmul.mubr.bf16.vlgmr.msra.gmra.mrb[8].mxu0 %v66_v54 }
  0x89   :  { %1338 = vmatmul.mubr.bf16.vlgmr.msra.gmra.mrb[8].mxu1 %v68_v55  ;;  %1704 = vmatpush3.bf16.msra.mxu0 %v1850_v58 }
  0x8a   :  { %1726 = vmatpush3.bf16.msra.mxu1 %v1851_v59  ;;  %1705 = vmatprep.subr.bf16.mxu0 %v1852_v60 }
  0x8b   :  { %1727 = vmatprep.subr.bf16.mxu1 %v1853_v61  ;;  %1377 = vmatprep.mubr.bf16.mxu0 %v71_v27 }
  0x8c   :  { %1417 = vmatprep.mubr.bf16.mxu1 %v73_v28 }
  0x8d   :  { %1706 = vmatpush3.bf16.msra.mxu0 %v1854_v62 }
  0x8e   :  { %1728 = vmatpush3.bf16.msra.mxu1 %v1855_v63  ;;  %1707 = vmatprep.subr.bf16.mxu0 %v1856_v0 }
  0x8f   :  { %1729 = vmatprep.subr.bf16.mxu1 %v1857_v1 }
  0x91   :  { %1708 = vmatpush3.bf16.msra.mxu0 %v1858_v2 }
  0x92   :  { %1730 = vmatpush3.bf16.msra.mxu1 %v1859_v3  ;;  %1709 = vmatprep.subr.bf16.mxu0 %v1860_v4 }
  0x93   :  { %1731 = vmatprep.subr.bf16.mxu1 %v1861_v5 }
  0x95   :  { %1710 = vmatpush3.bf16.msra.mxu0 %v1862_v6 }
  0x96   :  { %1732 = vmatpush3.bf16.msra.mxu1 %v1863_v7  ;;  %1711 = vmatprep.subr.bf16.mxu0 %v1864_v8 }
  0x97   :  { %1733 = vmatprep.subr.bf16.mxu1 %v1865_v9 }
  0x99   :  { %1712 = vmatpush3.bf16.msra.mxu0 %v1866_v10 }
  0x9a   :  { %1734 = vmatpush3.bf16.msra.mxu1 %v1867_v11  ;;  %1713 = vmatprep.subr.bf16.mxu0 %v1868_v12 }
  0x9b   :  { %1735 = vmatprep.subr.bf16.mxu1 %v1869_v13 }
  0x9d   :  { %1714 = vmatpush3.bf16.msra.mxu0 %v1870_v14 }
  0x9e   :  { %1736 = vmatpush3.bf16.msra.mxu1 %v1871_v15  ;;  %1715 = vmatprep.subr.bf16.mxu0 %v1872_v16 }
  0x9f   :  { %1737 = vmatprep.subr.bf16.mxu1 %v1873_v17 }
  0xa1   :  { %1716 = vmatpush3.bf16.msra.mxu0 %v1874_v18 }
  0xa2   :  { %1738 = vmatpush3.bf16.msra.mxu1 %v1875_v19  ;;  %1717 = vmatprep.subr.bf16.mxu0 %v1876_v20 }
  0xa3   :  { %1739 = vmatprep.subr.bf16.mxu1 %v1877_v21 }
  0xa5   :  { %1718 = vmatpush3.bf16.msra.mxu0 %v1878_v22 }
  0xa6   :  { %1740 = vmatpush3.bf16.msra.mxu1 %v1879_v23 }
  0xa8   :  { %1378 = vmatmul.mubr.bf16.vlgmr.msra.gmra.mrb[12].mxu0 %v70_v29 }
  0xa9   :  { %1418 = vmatmul.mubr.bf16.vlgmr.msra.gmra.mrb[12].mxu1 %v72_v31 }
 0x11b   :  { %v1587_v32 = vpop.f32.mrb[0].mxu0 }
 0x11c   :  { %v1609_v33 = vpop.f32.mrb[0].mxu1  ;;  %v1588_v35 = vpop.f32.mrb[1].mxu0 }
 0x11d   :  { %v1610_v36 = vpop.f32.mrb[1].mxu1  ;;  %v1589_v37 = vadd.f32 %v1588_v35, %v1587_v32  ;;  %v1590_v39 = vpop.f32.mrb[2].mxu0 }
 0x11e   :  { %v1611_v38 = vadd.f32 %v1610_v36, %v1609_v33  ;;  %v1612_v40 = vpop.f32.mrb[2].mxu1  ;;  %v1591_v41 = vpop.f32.mrb[3].mxu0 }
 0x11f   :  { %v1613_v42 = vpop.f32.mrb[3].mxu1  ;;  %v1140_v43 = vadd.f32 %v1589_v37, %v1442_v34 }
 0x121   :  { %v1180_v44 = vadd.f32 %v1611_v38, %v1140_v43 }
 0x13b   :  { %v1631_v45 = vpop.f32.mrb[4].mxu0 }
 0x13c   :  { %v1653_v46 = vpop.f32.mrb[4].mxu1  ;;  %v1632_v47 = vpop.f32.mrb[5].mxu0 }
 0x13d   :  { %v1633_v48 = vadd.f32 %v1632_v47, %v1631_v45  ;;  %v1654_v49 = vpop.f32.mrb[5].mxu1  ;;  %v1634_v50 = vpop.f32.mrb[6].mxu0 }
 0x13e   :  { %v1655_v51 = vadd.f32 %v1654_v49, %v1653_v46  ;;  %v1656_v52 = vpop.f32.mrb[6].mxu1  ;;  %v1635_v53 = vpop.f32.mrb[7].mxu0 }
 0x13f   :  { %v1220_v54 = vadd.f32 %v1633_v48, %v1180_v44  ;;  %v1657_v55 = vpop.f32.mrb[7].mxu1 }
 0x141   :  { %v1260_v56 = vadd.f32 %v1655_v51, %v1220_v54 }
 0x15b   :  { %v1675_v57 = vpop.f32.mrb[8].mxu0 }
 0x15c   :  { %v1697_v58 = vpop.f32.mrb[8].mxu1  ;;  %v1676_v59 = vpop.f32.mrb[9].mxu0 }
 0x15d   :  { %v1677_v60 = vadd.f32 %v1676_v59, %v1675_v57  ;;  %v1698_v61 = vpop.f32.mrb[9].mxu1  ;;  %v1678_v62 = vpop.f32.mrb[10].mxu0 }
 0x15e   :  { %v1699_v63 = vadd.f32 %v1698_v61, %v1697_v58  ;;  %v1700_v0 = vpop.f32.mrb[10].mxu1  ;;  %v1679_v1 = vpop.f32.mrb[11].mxu0 }
 0x15f   :  { %v1300_v2 = vadd.f32 %v1677_v60, %v1260_v56  ;;  %v1701_v3 = vpop.f32.mrb[11].mxu1 }
 0x161   :  { %v1340_v4 = vadd.f32 %v1699_v63, %v1300_v2 }
 0x17b   :  { %v1719_v5 = vpop.f32.mrb[12].mxu0 }
 0x17c   :  { %v1741_v6 = vpop.f32.mrb[12].mxu1  ;;  %v1720_v7 = vpop.f32.mrb[13].mxu0 }
 0x17d   :  { %v1742_v8 = vpop.f32.mrb[13].mxu1  ;;  %v1721_v9 = vadd.f32 %v1720_v7, %v1719_v5  ;;  %v1722_v11 = vpop.f32.mrb[14].mxu0 }
 0x17e   :  { %v1743_v10 = vadd.f32 %v1742_v8, %v1741_v6  ;;  %v1744_v12 = vpop.f32.mrb[14].mxu1  ;;  %v1723_v13 = vpop.f32.mrb[15].mxu0 }
 0x17f   :  { %v1745_v14 = vpop.f32.mrb[15].mxu1  ;;  %v1380_v15 = vadd.f32 %v1721_v9, %v1340_v4 }
 0x181   :  { %v1420_v16 = vadd.f32 %v1743_v10, %v1380_v15 }
 0x183   :  { %1425 = vst [vmem:[#allocation7] sm:$0xff] %v1420_v16 }
 0x184   :  { %1935 = shalt.err (!%p1932_p6)
}
 0x185   :  { %s1936_s15 = scalar_lea.hbm %s2026_s3, 128 }
 0x186   :  { %p1937_p7 = scmp.ne.s32.totalorder %s2026_s3, %s1936_s15  ;;  %p1940_p8 = scmp.lt.u32.totalorder %s1936_s15, %s2026_s3 }
 0x188   :  { %p1942_p9 = pnand %p1940_p8, %p1937_p7 }
 0x18a   :  { %1945 = shalt.err (!%p1942_p9)
}
 0x18b   :  { %1435 = dma.vmem_to_hbm [thread:$0]  %s1433_s11, 128, %s2026_s3, [#allocation4]  }
 0x18c   :  { %1950 = dma.done.wait [#allocation4], 128  }
 0x18d   :  { %1951 = vsyncadd [#allocation4], 4294967168 }
 0x18e   :  { %1439 = vsyncpa [#allocation3], 1 }
 0x18f   :  { %1440 = vsyncpa [#allocation6], 1 }
 0x190   :  { %1441 = vsyncpa [#allocation4], 1 }

</bundles_post_ra>
